<compile_context>
chip_gen: v7x
topology: tpu7x:2x2x1
jax: 0.10.0
libtpu: 0.0.40
codegen_flags: <defaults>
</compile_context>

<pallas_src>
import jax
import jax.numpy as jnp
from jax.experimental import pallas as pl
from jax.experimental.pallas import tpu as pltpu


def _copy_kernel(x_ref, o_ref):
    # Lambda's fn is a .view: pure data movement, no arithmetic.
    o_ref[...] = x_ref[...]


_SINGLE_BLOCK_MAX_BYTES = 256 * 1024      # below this: one block, no grid
_TARGET_BLOCK_BYTES = 8 * 1024 * 1024     # ~8 MiB per pipelined block (perf review)
_MIN_BLOCK_BYTES = 512 * 1024             # below this per-step overhead dominates
_VMEM_LIMIT_BYTES = 48 * 1024 * 1024      # 2 bufs x (in+out) x 8 MiB = 32 MiB + headroom
                                          # (< v7x 64 MiB physical, << v5e/v6e 128 MiB)


def _sublane_multiple(dtype) -> int:
    # f32 -> 8, bf16 -> 16, int8/fp8 -> 32 (sub-32-bit dtypes pack sublanes).
    return max(8, 32 // jnp.dtype(dtype).itemsize)


def _choose_slab(total: int, dtype):
    """Factor `total` elements into (rows, cols) with cols a multiple of 128
    and rows a multiple of the dtype's sublane packing.  Element order is
    unchanged (pure row-major reshape).  Returns None if impossible."""
    sub = _sublane_multiple(dtype)
    # Wider cols first: lane-dense unmasked stores + more divisor freedom.
    for cols in (4096, 2048, 1024, 512, 256, 128):
        if total % cols == 0:
            rows = total // cols
            if rows % sub == 0:
                return rows, cols
    return None


def _choose_row_tile(rows: int, cols: int, dtype) -> int:
    sub = _sublane_multiple(dtype)
    itemsize = jnp.dtype(dtype).itemsize
    target = max(sub, _TARGET_BLOCK_BYTES // (cols * itemsize))
    t = min(rows, target)
    t -= t % sub
    t = max(t, sub)
    while rows % t != 0:
        t -= sub
    # No even-grid halving: one-block imbalance between v7x's two TensorCores
    # is cheaper than doubling the per-step-overhead fraction; v5e/v6e have a
    # single TensorCore so the heuristic would buy nothing there anyway.
    return t


def lambda_flatten(x: jax.Array, materialize: bool = False) -> jax.Array:
    """Pallas implementation of Lambda(lambda x: x.view(x.size(0), -1)).

    x: (N, C, H, W) (or any N-D) array.  Returns (N, prod(rest)) with torch
    .view semantics (row-major element order preserved exactly).

    Default path is the metadata-only reshape (a .view needs no HBM traffic).
    Set materialize=True to force a contiguous copy via the Pallas kernel.
    """
    n = x.shape[0]
    flat = 1
    for d in x.shape[1:]:
        flat *= d

    # Exact torch .view(N, -1) semantics: metadata-only, zero HBM traffic.
    x2d = x.reshape(n, flat)
    if not materialize:
        return x2d

    total = n * flat
    itemsize = jnp.dtype(x.dtype).itemsize
    total_bytes = total * itemsize
    cost = pl.CostEstimate(flops=0, transcendentals=0,
                           bytes_accessed=2 * total_bytes)

    slab_shape = _choose_slab(total, x.dtype)
    if slab_shape is None:
        # TODO(synk): element counts with no (sublane,128)-dense factorization
        # fall back to the metadata-only reshape (still exact, zero traffic).
        return x2d
    rows, cols = slab_shape
    slab = x2d.reshape(rows, cols)           # metadata-only, order preserved

    # ---- tiny inputs: single dense block, no grid, no per-step overhead ----
    if total_bytes <= _SINGLE_BLOCK_MAX_BYTES:
        out_slab = pl.pallas_call(
            _copy_kernel,
            out_shape=jax.ShapeDtypeStruct((rows, cols), x.dtype),
            cost_estimate=cost,
            compiler_params=pltpu.CompilerParams(
                vmem_limit_bytes=_VMEM_LIMIT_BYTES),
        )(slab)
        return out_slab.reshape(n, flat)

    # ---- larger inputs: ~8 MiB dense blocks over a 1-D parallel grid --------
    row_tile = _choose_row_tile(rows, cols, x.dtype)
    if row_tile * cols * itemsize < _MIN_BLOCK_BYTES and rows // row_tile > 1:
        # Degenerate divisor structure would force tiny tiles where per-step
        # overhead dominates; the reshape-only path is exact and free.
        return x2d

    out_slab = pl.pallas_call(
        _copy_kernel,
        out_shape=jax.ShapeDtypeStruct((rows, cols), x.dtype),
        grid_spec=pltpu.PrefetchScalarGridSpec(
            num_scalar_prefetch=0,
            grid=(rows // row_tile,),
            in_specs=[pl.BlockSpec((row_tile, cols), lambda i: (i, 0))],
            out_specs=pl.BlockSpec((row_tile, cols), lambda i: (i, 0)),
        ),
        cost_estimate=cost,
        compiler_params=pltpu.CompilerParams(
            dimension_semantics=("parallel",),    # shards across TCs on v7x
            vmem_limit_bytes=_VMEM_LIMIT_BYTES,
        ),
    )(slab)
    return out_slab.reshape(n, flat)


if __name__ == "__main__":
    key = jax.random.PRNGKey(0)

    # Tutorial-sized input: Lambda flatten right after AvgPool2d (NCHW).
    x_small = jax.random.normal(key, (2, 4, 16, 16), dtype=jnp.float32)
    ref_small = x_small.reshape(x_small.shape[0], -1)

    # Default (recommended) path: metadata-only view, no kernel launch.
    y_view = jax.block_until_ready(lambda_flatten(x_small))
    assert y_view.shape == (2, 4 * 16 * 16), y_view.shape
    assert y_view.dtype == x_small.dtype
    assert bool(jnp.array_equal(y_view, ref_small)), "view path mismatch"

    # Materialized-copy path, tiny-input branch: single dense-slab block.
    y_small = jax.block_until_ready(lambda_flatten(x_small, materialize=True))
    assert y_small.shape == (2, 4 * 16 * 16), y_small.shape
    assert y_small.dtype == x_small.dtype
    assert bool(jnp.array_equal(y_small, ref_small)), "single-block path mismatch"

    # Larger input to exercise the tiled (grid) copy path as well.
    x_big = jax.random.normal(jax.random.PRNGKey(0), (8, 32, 32, 32),
                              dtype=jnp.float32)
    ref_big = x_big.reshape(x_big.shape[0], -1)
    y_big = jax.block_until_ready(lambda_flatten(x_big, materialize=True))
    assert y_big.shape == (8, 32 * 32 * 32), y_big.shape
    assert bool(jnp.array_equal(y_big, ref_big)), "tiled path mismatch"

    print("KERNEL_OK")
</pallas_src>

<mosaic_0001>
module attributes {stable_mosaic.version = 11 : i64} {
  func.func @_copy_kernel(%arg0: memref<8x256xf32, #tpu.memory_space<vmem>>, %arg1: memref<8x256xf32, #tpu.memory_space<vmem>>) attributes {dimension_semantics = [], scalar_prefetch = 0 : i64, scratch_operands = 0 : i64, tpu.core_type = #tpu.core_type<tc>} {
    %c0 = arith.constant 0 : index
    %c0_0 = arith.constant 0 : index
    %0 = vector.load %arg0[%c0, %c0_0] : memref<8x256xf32, #tpu.memory_space<vmem>>, vector<8x256xf32>
    %c0_1 = arith.constant 0 : index
    %c0_2 = arith.constant 0 : index
    %1 = vector.load %arg1[%c0_1, %c0_2] : memref<8x256xf32, #tpu.memory_space<vmem>>, vector<8x256xf32>
    tpu.vector_store %arg1[%c0_1, %c0_2], %0 {strides = array<i32>} : memref<8x256xf32, #tpu.memory_space<vmem>>, vector<8x256xf32>,
    return
  }
}

</mosaic_0001>

<bundles_post_ra>
// kernel: tpu_custom_call.1
= control target key start
LH: loop header
LB: loop body
LE: loop exit
PB: predicated region body
PF: predicated region fallthrough
CT: control target
= control target key end

     0   :  { %6 = vsyncpa [#allocation3], 0  ;;  %s126_s0 = inlined_call_operand.hbm [shape: f32[8,256], index: 0, kind: input, shape index: {}]   ;;  %s127_s1 = inlined_call_operand.hbm [shape: f32[8,256], index: 1, kind: output, shape index: {}]  }
   0x1   :  { %7 = vsyncpa [#allocation4], 0  ;;  %s90_s6 = smov [#allocation2]   ;;  %s42_s10 = scalar_lea.hbm %s126_s0, 256 }
   0x2   :  { %s14_s7 = sshll.u32 %s90_s6, 4  ;;  %p43_p0 = scmp.ne.s32.totalorder %s126_s0, %s42_s10  ;;  %s15_s7 = int_to_ptr.vmem [resolvable:$true] %s14_s7 }
   0x3   :  { %p46_p1 = scmp.lt.u32.totalorder %s42_s10, %s126_s0 }
   0x5   :  { %p48_p2 = pnand %p46_p1, %p43_p0 }
   0x7   :  { %51 = shalt.err (!%p48_p2)
}
   0x8   :  { %s52_s15 = scalar_lea.vmem %s15_s7, 256  ;;  %p57_p4 = scmp.lt.s32.totalorder %s15_s7, %s15_s7 }
   0x9   :  { %p53_p3 = scmp.ne.s32.totalorder %s15_s7, %s52_s15  ;;  %p58_p5 = scmp.lt.s32.totalorder %s52_s15, %s52_s15 }
   0xb   :  { %p59_p6 = por %p58_p5, %p57_p4 }
   0xd   :  { %p60_p7 = pnand %p59_p6, %p53_p3 }
   0xf   :  { %63 = shalt.err (!%p60_p7)
}
  0x10   :  { %17 = dma.hbm_to_vmem [thread:$0]  %s126_s0, 256, %s15_s7, [#allocation3]  }
  0x11   :  { %86 = dma.done.wait [#allocation3], 256  }
  0x12   :  { %87 = vsyncadd [#allocation3], 4294967040  ;;  %s91_s18 = smov [#allocation5]   ;;  %v21_v0 = vld [vmem:[#allocation2] sm:$0xff]  ;;  %v22_v1 = vld [vmem:[#allocation2 + $0x8] sm:$0xff] }
  0x13   :  { %s31_s19 = sshll.u32 %s91_s18, 4  ;;  %23 = vst [vmem:[#allocation5] sm:$0xff] %v21_v0  ;;  %24 = vst [vmem:[#allocation5 + $0x8] sm:$0xff] %v22_v1  ;;  %s32_s19 = int_to_ptr.vmem [resolvable:$true] %s31_s19 }
  0x14   :  { %s64_s20 = scalar_lea.vmem %s32_s19, 256  ;;  %p69_p9 = scmp.lt.s32.totalorder %s32_s19, %s32_s19 }
  0x15   :  { %p65_p8 = scmp.ne.s32.totalorder %s32_s19, %s64_s20  ;;  %p70_p10 = scmp.lt.s32.totalorder %s64_s20, %s64_s20 }
  0x17   :  { %p71_p11 = por %p70_p10, %p69_p9 }
  0x19   :  { %p72_p12 = pnand %p71_p11, %p65_p8 }
  0x1b   :  { %75 = shalt.err (!%p72_p12)
}
  0x1c   :  { %s76_s0 = scalar_lea.hbm %s127_s1, 256 }
  0x1d   :  { %p77_p13 = scmp.ne.s32.totalorder %s127_s1, %s76_s0  ;;  %p80_p0 = scmp.lt.u32.totalorder %s76_s0, %s127_s1 }
  0x1f   :  { %p82_p1 = pnand %p80_p0, %p77_p13 }
  0x21   :  { %85 = shalt.err (!%p82_p1)
}
  0x22   :  { %34 = dma.vmem_to_hbm [thread:$0]  %s32_s19, 256, %s127_s1, [#allocation4]  }
  0x23   :  { %88 = dma.done.wait [#allocation4], 256  }
  0x24   :  { %89 = vsyncadd [#allocation4], 4294967040 }
  0x25   :  { %38 = vsyncpa [#allocation3], 1 }
  0x26   :  { %39 = vsyncpa [#allocation4], 1 }

</bundles_post_ra>
